<compile_context>
chip_gen: v7x
topology: tpu7x:2x2x1
jax: 0.10.0
libtpu: 0.0.40
codegen_flags: <defaults>
</compile_context>

<pallas_src>
import math

import jax
import jax.numpy as jnp
from jax.experimental import pallas as pl
from jax.experimental.pallas import tpu as pltpu


def _round_up(x, m):
    return ((x + m - 1) // m) * m


def _generator_kernel(x_ref, wt_ref, b_ref, o_ref):
    """Fused linear + log_softmax over the vocab (last / lane) axis.

    x_ref  : (TB, D) bf16   row tile of the input activations
    wt_ref : (D, V)  bf16   pre-transposed projection weight (W.T), resident
    b_ref  : (1, V)  f32    bias, resident
    o_ref  : (TB, V)        log-probabilities
    """
    # MXU: bf16 x bf16 -> f32 accumulation, lane-dense N = V.
    logits = jnp.dot(x_ref[...], wt_ref[...],
                     preferred_element_type=jnp.float32) + b_ref[...]

    # Numerically stable log-softmax over the vocab axis, all stats in f32.
    m = jnp.max(logits, axis=-1, keepdims=True)
    z = logits - m
    lse = jnp.log(jnp.sum(jnp.exp(z), axis=-1, keepdims=True))
    o_ref[...] = (z - lse).astype(o_ref.dtype)


def generator_forward(x, w, b, *, block_rows=256):
    """x: (N, d_model). w: (vocab, d_model), b: (vocab,) -- PyTorch Linear layout.

    Returns (N, vocab) = log_softmax(x @ w.T + b, axis=1).
    """
    N, D = x.shape
    V, D2 = w.shape
    assert D == D2, "weight / input d_model mismatch"
    out_dtype = x.dtype
    out_bytes = jnp.dtype(out_dtype).itemsize

    # MXU inputs in bf16 (full-rate matmul path, half the weight bytes);
    # everything after the dot stays in f32.
    x_mm = x.astype(jnp.bfloat16)
    wt = jnp.transpose(w).astype(jnp.bfloat16)   # (D, V), host-side pre-transpose
    b2 = b.reshape(1, V).astype(jnp.float32)

    # Row tile: big enough to feed the MXU (default 256, multiple of 16 for
    # bf16 sublane packing), capped so the "parallel" row axis keeps at least
    # two grid steps (v7x has two TensorCores).
    SUB = 16
    tb = min(block_rows, _round_up(N, SUB))
    if N > SUB:
        tb = min(tb, _round_up(pl.cdiv(N, 2), SUB))
    tb = _round_up(max(tb, SUB), SUB)
    grid = (pl.cdiv(N, tb),)

    # Scoped-VMEM budget: resident weight/bias + double-buffered x / out tiles.
    resident_bytes = D * V * 2 + V * 4
    tile_bytes = 2 * (tb * D * 2) + 2 * (tb * V * out_bytes)
    vmem_limit = int(min(64 << 20,
                         max(32 << 20, resident_bytes + tile_bytes + (4 << 20))))

    cost = pl.CostEstimate(
        flops=2 * N * D * V,
        transcendentals=N * V,          # one exp per logit (per-row log negligible)
        bytes_accessed=N * D * 2 + D * V * 2 + V * 4 + N * V * out_bytes,
    )

    def build(single_buffer_resident):
        resident_kw = ({"pipeline_mode": pl.Buffered(buffer_count=1)}
                       if single_buffer_resident else {})
        return pl.pallas_call(
            _generator_kernel,
            out_shape=jax.ShapeDtypeStruct((N, V), out_dtype),
            grid_spec=pltpu.PrefetchScalarGridSpec(
                num_scalar_prefetch=0,
                grid=grid,
                in_specs=[
                    pl.BlockSpec((tb, D), lambda i: (i, 0)),                 # x row tile
                    pl.BlockSpec((D, V), lambda i: (0, 0), **resident_kw),   # W.T, resident
                    pl.BlockSpec((1, V), lambda i: (0, 0), **resident_kw),   # bias, resident
                ],
                out_specs=pl.BlockSpec((tb, V), lambda i: (i, 0)),
            ),
            compiler_params=pltpu.CompilerParams(
                dimension_semantics=("parallel",),
                vmem_limit_bytes=vmem_limit),
            cost_estimate=cost,
        )

    try:
        out = build(True)(x_mm, wt, b2)
        return jax.block_until_ready(out)
    except Exception:
        # Fallback for Pallas versions without single-buffer pipeline_mode
        # support: default (double-buffered) resident weight / bias.
        out = build(False)(x_mm, wt, b2)
        return jax.block_until_ready(out)


def _reference(x, w, b):
    """Pure-JAX reference mirroring the PyTorch forward."""
    logits = x @ w.T + b
    return jax.nn.log_softmax(logits, axis=1)


if __name__ == "__main__":
    # Small shapes consistent with the module: N tokens, d_model=32, vocab=128.
    N, D, V = 32, 32, 128

    key = jax.random.PRNGKey(0)
    kx, kw, kb = jax.random.split(key, 3)
    scale = 1.0 / math.sqrt(D)
    w = jax.random.uniform(kw, (V, D), jnp.float32, -scale, scale)
    b = jax.random.uniform(kb, (V,), jnp.float32, -scale, scale)
    x = jax.random.normal(kx, (N, D), jnp.float32)

    out = jax.block_until_ready(generator_forward(x, w, b))

    # Reference with identical bf16 input quantization (kernel numerics) ...
    xq = x.astype(jnp.bfloat16).astype(jnp.float32)
    wq = w.astype(jnp.bfloat16).astype(jnp.float32)
    ref_q = jax.nn.log_softmax(xq @ wq.T + b, axis=1)
    # ... and the full-precision module reference (looser tol: bf16 MXU inputs).
    ref = _reference(x, w, b)

    assert out.shape == ref.shape, "shape mismatch"
    assert jnp.allclose(out, ref_q, atol=2e-4, rtol=2e-4), \
        "mismatch vs bf16-quantized reference"
    assert jnp.allclose(out, ref, atol=3e-2, rtol=3e-2), \
        "mismatch vs f32 reference"

    print("KERNEL_OK")
</pallas_src>

<mosaic_0001>
module attributes {stable_mosaic.version = 11 : i64} {
  func.func @_generator_kernel(%arg0: i32, %arg1: memref<16x32xbf16, #tpu.memory_space<vmem>>, %arg2: memref<32x128xbf16, #tpu.memory_space<vmem>>, %arg3: memref<1x128xf32, #tpu.memory_space<vmem>>, %arg4: memref<16x128xf32, #tpu.memory_space<vmem>>) attributes {dimension_semantics = [#tpu.dimension_semantics<parallel>], iteration_bounds = array<i64: 2>, scalar_prefetch = 0 : i64, scratch_operands = 0 : i64, tpu.core_type = #tpu.core_type<tc>, window_params = [{transform_indices = @transform_0, window_bounds = array<i64: 16, 32>}, {pipeline_mode = #tpu.pipeline_mode<synchronous>, transform_indices = @transform_1, window_bounds = array<i64: 32, 128>}, {pipeline_mode = #tpu.pipeline_mode<synchronous>, transform_indices = @transform_2, window_bounds = array<i64: 1, 128>}, {transform_indices = @transform_3, window_bounds = array<i64: 16, 128>}]} {
    %c0 = arith.constant 0 : index
    %c0_0 = arith.constant 0 : index
    %0 = vector.load %arg1[%c0, %c0_0] : memref<16x32xbf16, #tpu.memory_space<vmem>>, vector<16x32xbf16>
    %c0_1 = arith.constant 0 : index
    %c0_2 = arith.constant 0 : index
    %1 = vector.load %arg2[%c0_1, %c0_2] : memref<32x128xbf16, #tpu.memory_space<vmem>>, vector<32x128xbf16>
    %cst = arith.constant dense<0.000000e+00> : vector<16x128xf32>
    %2 = tpu.matmul %0, %1, %cst {dimension_numbers = #tpu.dot_dimension_numbers<[1], [0], [0], [1], [0, 0, 1, 1], [], []>} : vector<16x32xbf16>, vector<32x128xbf16>, vector<16x128xf32> -> vector<16x128xf32>
    %c0_3 = arith.constant 0 : index
    %c0_4 = arith.constant 0 : index
    %3 = vector.load %arg3[%c0_3, %c0_4] : memref<1x128xf32, #tpu.memory_space<vmem>>, vector<1x128xf32>
    %4 = vector.broadcast %3 : vector<1x128xf32> to vector<16x128xf32>
    %5 = arith.addf %2, %4 : vector<16x128xf32>
    %cst_5 = arith.constant dense<0xFF800000> : vector<16xf32>
    %6 = vector.multi_reduction <maximumf>, %5, %cst_5 [1] : vector<16x128xf32> to vector<16xf32>
    %7 = vector.shape_cast %6 : vector<16xf32> to vector<16x1xf32>
    %8 = vector.broadcast %7 : vector<16x1xf32> to vector<16x128xf32>
    %9 = arith.subf %5, %8 : vector<16x128xf32>
    %10 = math.exp %9 : vector<16x128xf32>
    %cst_6 = arith.constant dense<0.000000e+00> : vector<16xf32>
    %11 = vector.multi_reduction <add>, %10, %cst_6 [1] : vector<16x128xf32> to vector<16xf32>
    %12 = vector.shape_cast %11 : vector<16xf32> to vector<16x1xf32>
    %13 = math.log %12 : vector<16x1xf32>
    %14 = vector.broadcast %13 : vector<16x1xf32> to vector<16x128xf32>
    %15 = arith.subf %9, %14 : vector<16x128xf32>
    %c0_7 = arith.constant 0 : index
    %c0_8 = arith.constant 0 : index
    %16 = vector.load %arg4[%c0_7, %c0_8] : memref<16x128xf32, #tpu.memory_space<vmem>>, vector<16x128xf32>
    tpu.vector_store %arg4[%c0_7, %c0_8], %15 {strides = array<i32>} : memref<16x128xf32, #tpu.memory_space<vmem>>, vector<16x128xf32>,
    return
  }
  func.func @transform_0(%arg0: i32) -> (i32, i32) {
    %c0_i32 = arith.constant 0 : i32
    %c0_i32_0 = arith.constant 0 : i32
    return %arg0, %c0_i32 : i32, i32
  }
  func.func @transform_1(%arg0: i32) -> (i32, i32) {
    %c0_i32 = arith.constant 0 : i32
    %c0_i32_0 = arith.constant 0 : i32
    %c0_i32_1 = arith.constant 0 : i32
    return %c0_i32, %c0_i32_0 : i32, i32
  }
  func.func @transform_2(%arg0: i32) -> (i32, i32) {
    %c0_i32 = arith.constant 0 : i32
    %c0_i32_0 = arith.constant 0 : i32
    %c0_i32_1 = arith.constant 0 : i32
    return %c0_i32, %c0_i32_0 : i32, i32
  }
  func.func @transform_3(%arg0: i32) -> (i32, i32) {
    %c0_i32 = arith.constant 0 : i32
    %c0_i32_0 = arith.constant 0 : i32
    return %arg0, %c0_i32 : i32, i32
  }
}

module attributes {stable_mosaic.version = 11 : i64} {
  func.func @_generator_kernel(%arg0: i32, %arg1: memref<16x32xbf16, #tpu.memory_space<vmem>>, %arg2: memref<32x128xbf16, #tpu.memory_space<vmem>>, %arg3: memref<1x128xf32, #tpu.memory_space<vmem>>, %arg4: memref<16x128xf32, #tpu.memory_space<vmem>>) attributes {dimension_semantics = [#tpu.dimension_semantics<parallel>], iteration_bounds = array<i64: 2>, scalar_prefetch = 0 : i64, scratch_operands = 0 : i64, tpu.core_type = #tpu.core_type<tc>, window_params = [{transform_indices = @transform_0, window_bounds = array<i64: 16, 32>}, {pipeline_mode = #tpu.pipeline_mode<synchronous>, transform_indices = @transform_1, window_bounds = array<i64: 32, 128>}, {pipeline_mode = #tpu.pipeline_mode<synchronous>, transform_indices = @transform_2, window_bounds = array<i64: 1, 128>}, {transform_indices = @transform_3, window_bounds = array<i64: 16, 128>}]} {
    %c0 = arith.constant 0 : index
    %c0_0 = arith.constant 0 : index
    %0 = vector.load %arg1[%c0, %c0_0] : memref<16x32xbf16, #tpu.memory_space<vmem>>, vector<16x32xbf16>
    %c0_1 = arith.constant 0 : index
    %c0_2 = arith.constant 0 : index
    %1 = vector.load %arg2[%c0_1, %c0_2] : memref<32x128xbf16, #tpu.memory_space<vmem>>, vector<32x128xbf16>
    %cst = arith.constant dense<0.000000e+00> : vector<16x128xf32>
    %2 = tpu.matmul %0, %1, %cst {dimension_numbers = #tpu.dot_dimension_numbers<[1], [0], [0], [1], [0, 0, 1, 1], [], []>} : vector<16x32xbf16>, vector<32x128xbf16>, vector<16x128xf32> -> vector<16x128xf32>
    %c0_3 = arith.constant 0 : index
    %c0_4 = arith.constant 0 : index
    %3 = vector.load %arg3[%c0_3, %c0_4] : memref<1x128xf32, #tpu.memory_space<vmem>>, vector<1x128xf32>
    %4 = vector.broadcast %3 : vector<1x128xf32> to vector<16x128xf32>
    %5 = arith.addf %2, %4 : vector<16x128xf32>
    %cst_5 = arith.constant dense<0xFF800000> : vector<16xf32>
    %6 = vector.multi_reduction <maximumf>, %5, %cst_5 [1] : vector<16x128xf32> to vector<16xf32>
    %7 = vector.shape_cast %6 : vector<16xf32> to vector<16x1xf32>
    %8 = vector.broadcast %7 : vector<16x1xf32> to vector<16x128xf32>
    %9 = arith.subf %5, %8 : vector<16x128xf32>
    %10 = math.exp %9 : vector<16x128xf32>
    %cst_6 = arith.constant dense<0.000000e+00> : vector<16xf32>
    %11 = vector.multi_reduction <add>, %10, %cst_6 [1] : vector<16x128xf32> to vector<16xf32>
    %12 = vector.shape_cast %11 : vector<16xf32> to vector<16x1xf32>
    %13 = math.log %12 : vector<16x1xf32>
    %14 = vector.broadcast %13 : vector<16x1xf32> to vector<16x128xf32>
    %15 = arith.subf %9, %14 : vector<16x128xf32>
    %c0_7 = arith.constant 0 : index
    %c0_8 = arith.constant 0 : index
    %16 = vector.load %arg4[%c0_7, %c0_8] : memref<16x128xf32, #tpu.memory_space<vmem>>, vector<16x128xf32>
    tpu.vector_store %arg4[%c0_7, %c0_8], %15 {strides = array<i32>} : memref<16x128xf32, #tpu.memory_space<vmem>>, vector<16x128xf32>,
    return
  }
  func.func @transform_0(%arg0: i32) -> (i32, i32) {
    %c0_i32 = arith.constant 0 : i32
    %c0_i32_0 = arith.constant 0 : i32
    return %arg0, %c0_i32 : i32, i32
  }
  func.func @transform_1(%arg0: i32) -> (i32, i32) {
    %c0_i32 = arith.constant 0 : i32
    %c0_i32_0 = arith.constant 0 : i32
    %c0_i32_1 = arith.constant 0 : i32
    return %c0_i32, %c0_i32_0 : i32, i32
  }
  func.func @transform_2(%arg0: i32) -> (i32, i32) {
    %c0_i32 = arith.constant 0 : i32
    %c0_i32_0 = arith.constant 0 : i32
    %c0_i32_1 = arith.constant 0 : i32
    return %c0_i32, %c0_i32_0 : i32, i32
  }
  func.func @transform_3(%arg0: i32) -> (i32, i32) {
    %c0_i32 = arith.constant 0 : i32
    %c0_i32_0 = arith.constant 0 : i32
    return %arg0, %c0_i32 : i32, i32
  }
}

</mosaic_0001>

<bundles_post_ra>
// kernel: tpu_custom_call.1
= control target key start
LH: loop header
LB: loop body
LE: loop exit
PB: predicated region body
PF: predicated region fallthrough
CT: control target
= control target key end

     0   :  { %8 = vsyncpa [#allocation3], 0  ;;  %s879_s0 = inlined_call_operand.hbm [shape: bf16[32,32], index: 0, kind: input, shape index: {}]   ;;  %s880_s1 = inlined_call_operand.hbm [shape: bf16[32,128], index: 1, kind: input, shape index: {}]   ;;  %s881_s2 = inlined_call_operand.vmem [shape: f32[1,128], index: 2, kind: input, shape index: {}]   ;;  %s882_s3 = inlined_call_operand.hbm [shape: f32[32,128], index: 3, kind: output, shape index: {}]  }
   0x1   :  { %10 = vsyncpa [#allocation3 + $0x1], 0 }
   0x2   :  { %11 = vsyncpa [#allocation6], 0 }
   0x3   :  { %12 = vsyncpa [#allocation4], 0 }
   0x4   :  { %14 = vsyncpa [#allocation4 + $0x1], 0  ;;  %s668_s12 = smov 0   ;;  %s670_s13 = smov 0  }
   0x5   :  { %s672_s14 = smov 0   ;;  %s674_s15 = smov 0  }
   0x6 LB: > { %s689_s16 = sadd.s32 4294967295, %s637_s15   ;;  %s401_s17 = sadd.s32 4294967294, %s637_s15   ;;  %s637_s15 = sphi %s674_s15, %s902_s15   ;;  %s633_s14 = sphi %s672_s14, %s901_s14   ;;  %s629_s13 = sphi %s670_s13, %s900_s13   ;;  %s625_s12 = sphi %s668_s12, %s899_s12  }
   0x7   : > { %p40_p0 = scmp.ne.s32.totalorder %s629_s13, %s625_s12  ;;  %p883_p1 = scmp.eq.s32.totalorder %s689_s16, 0 }
   0x8   : > { %p112_p3 = scmp.eq.s32.totalorder %s401_s17, 1  ;;  %p402_p5 = scmp.ge.s32.totalorder %s637_s15, 1 }
   0x9   : > { %p698_p4 = por %p883_p1, %p40_p0  ;;  %p119_p7 = scmp.lt.s32.totalorder %s637_s15, 3 }
   0xa   : > { %p703_p6 = por %p112_p3, %p40_p0  ;;  %s639_s21 = smov [#allocation5]  }
   0xb   : > { %s886_s18 = scalar_select %p698_p4, 1, 0 }
   0xc   : > { %s887_s19 = scalar_select %p703_p6, 1, 0 }
   0xd   : > { %p708_p8 = pnand %p402_p5, %p119_p7  ;;  %s131_s22 = sshll.u32 %s639_s21, 4  ;;  %s712_s22 = int_to_ptr.vmem [resolvable:$true] %s131_s22 }
   0xe   : > { %s724_s24 = sadd.s32 1, %s637_s15   ;;  %s27_s25 = sadd.s32 1, %s633_s14 }
   0xf   : > { %s888_s20 = scalar_select %p708_p8, 1, 0 }
  0x10   : > { %p443_p9 = pneg %p708_p8  ;;  %s24_s26 = ssub.s32 %s637_s15, %s724_s24 }
  0x11   : > { %s509_s29 = scalar_lea.hbm %s880_s1, 256 }
  0x12   : > { %p719_p11 = pnand %p443_p9, %p883_p1  ;;  %p510_p12 = scmp.ne.s32.totalorder %s880_s1, %s509_s29 }
  0x13   : > { %p516_p5 = scmp.lt.u32.totalorder %s509_s29, %s880_s1 }
  0x14   : > { %p511_p13 = pneg %p719_p11 }
  0x16   : > { %p512_p0 = pnand %p511_p13, %p510_p12 }
  0x18   : > { %p513_p3 = pneg %p512_p0 }
  0x1a   : > { %p518_p7 = pnand %p516_p5, %p513_p3 }
  0x1c   : > { %521 = shalt.err (!%p518_p7)
}
  0x1d   : > { %s522_s7 = scalar_lea.vmem %s712_s22, 256  ;;  %p530_p2 = scmp.lt.s32.totalorder %s712_s22, %s712_s22 }
  0x1e   : > { %p523_p9 = scmp.ne.s32.totalorder %s712_s22, %s522_s7  ;;  %p531_p6 = scmp.lt.s32.totalorder %s522_s7, %s522_s7 }
  0x20   : > { %p525_p10 = pnand %p523_p9, %p511_p13  ;;  %p532_p4 = por %p531_p6, %p530_p2 }
  0x22   : > { %p526_p1 = pneg %p525_p10 }
  0x24   : > { %p533_p8 = pnand %p532_p4, %p526_p1 }
  0x26   : > { %536 = shalt.err (!%p533_p8)
}
  0x27   : > { %s640_s8 = smov 64   ;;  %s641_s9 = smov 4  }
  0x28   : > { %446 = dma.hbm_to_vmem [thread:$0]  (!%p719_p11), %s880_s1, 256, %s712_s22, [#allocation6], %s640_s8, %s640_s8, %s641_s9  }
  0x29   : > { %p25_p1 = scmp.eq.s32.totalorder %s24_s26, 0  ;;  %p34_p2 = scmp.ne.s32.totalorder %s633_s14, %s629_s13 }
  0x2a   : > { %p35_p4 = scmp.eq.s32.totalorder %s637_s15, 0  ;;  %p456_p6 = scmp.lt.s32.totalorder %s637_s15, 2 }
  0x2b   : > { %s758_s17 = scalar_select %p25_p1, %s633_s14, %s27_s25  }
  0x2c   : > { %p36_p8 = por %p35_p4, %p34_p2  ;;  %p890_p10 = scmp.eq.s32.totalorder %s689_s16, 1 }
  0x2d   : > { %s148_s23 = sand.u32 1, %s633_s14   ;;  %s422_s27 = sshll.u32 %s637_s15, 7 }
  0x2e   : > { %p762_p12 = por %p890_p10, %p34_p2  ;;  %s405_s28 = sshll.u32 %s148_s23, 3 }
  0x2f   : > { %s771_s4 = scalar_lea.hbm %s879_s0, %s422_s27  ;;  %s152_s22 = scalar_lea.vmem [#allocation2], %s405_s28 }
  0x30   : > { %s159_s25 = sshll.u32 %s152_s22, 4  ;;  %p773_p11 = pnand %p456_p6, %p36_p8  ;;  %s777_s25 = int_to_ptr.vmem [resolvable:$true] %s159_s25 }
  0x31   : > { %s779_s5 = scalar_lea.sflag [#allocation3], %s148_s23  ;;  %s537_s6 = scalar_lea.hbm %s771_s4, 128 }
  0x32   : > { %p538_p13 = scmp.ne.s32.totalorder %s771_s4, %s537_s6  ;;  %p539_p0 = pneg %p773_p11 }
  0x33   : > { %s542_s11 = scalar_lea.hbm %s879_s0, 256  ;;  %p543_p7 = scmp.lt.u32.totalorder %s771_s4, %s879_s0 }
  0x34   : > { %p540_p3 = pnand %p539_p0, %p538_p13  ;;  %p544_p9 = scmp.lt.u32.totalorder %s542_s11, %s537_s6 }
  0x35   : > { %p546_p2 = scmp.lt.u32.totalorder %s537_s6, %s771_s4 }
  0x36   : > { %p541_p5 = pneg %p540_p3  ;;  %p545_p1 = por %p544_p9, %p543_p7 }
  0x38   : > { %p547_p4 = por %p546_p2, %p545_p1 }
  0x3a   : > { %p548_p6 = pnand %p547_p4, %p541_p5 }
  0x3c   : > { %551 = shalt.err (!%p548_p6)
}
  0x3d   : > { %s552_s23 = scalar_lea.vmem %s777_s25, 128  ;;  %s642_s29 = smov [#allocation2]  }
  0x3e   : > { %p553_p8 = scmp.ne.s32.totalorder %s777_s25, %s552_s23  ;;  %s557_s30 = sshll.u32 %s642_s29, 4  ;;  %s558_s30 = int_to_ptr.vmem [resolvable:$false] %s557_s30 }
  0x3f   : > { %s559_s22 = scalar_lea.vmem %s558_s30, 256  ;;  %p560_p3 = scmp.lt.s32.totalorder %s777_s25, %s558_s30 }
  0x40   : > { %p555_p10 = pnand %p553_p8, %p539_p0  ;;  %p561_p7 = scmp.lt.s32.totalorder %s559_s22, %s552_s23 }
  0x42   : > { %p556_p13 = pneg %p555_p10  ;;  %p562_p9 = por %p561_p7, %p560_p3 }
  0x44   : > { %p563_p1 = pnand %p562_p9, %p556_p13 }
  0x46   : > { %566 = shalt.err (!%p563_p1)
}
  0x47   : > { %450 = dma.hbm_to_vmem [thread:$0]  (!%p773_p11), %s771_s4, 128, %s777_s25, %s779_s5, %s640_s8, %s640_s8, %s641_s9  }
  0x48   : > { %p893_p0 = scmp.ne.s32.totalorder %s888_s20, 0 }
  0x49   : > { %s813_s6 = sand.u32 (!%p893_p0), 1, %s629_s13   ;;  %p894_p5 = scmp.ne.s32.totalorder (!%p893_p0), %s886_s18, 0 }
  0x4a   : > { %171 = sbr.rel (%p893_p0) target bundleno = 641 (0x281), region = 32  ;;  %s409_s7 = sshll.u32 (!%p893_p0), %s813_s6, 3 }
  0x4b   : > { %s174_s10 = scalar_lea.sflag (!%p893_p0), [#allocation3], %s813_s6  ;;  %s177_s11 = scalar_lea.vmem (!%p893_p0), [#allocation2], %s409_s7 }
  0x51   : > { %612 = dma.done.wait (%p894_p5), %s174_s10, 128  }
  0x52   : > { %614 = vsyncadd (%p894_p5), %s174_s10, 4294967168  ;;  %p895_p2 = scmp.eq.s32.totalorder %s689_s16, 0 }
  0x54   : > { %616 = dma.done.wait (%p895_p2), [#allocation6], 256   ;;  %p896_p11 = pmov %p895_p2 }
  0x55   : > { %v643_v0 = vmov 0.0   ;;  %vm644_vm0 = vmmov 0   ;;  %v498_v1 = vld [vmem:[#allocation5] sm:$0xff]   ;;  %v499_v2 = vld [vmem:[#allocation5 + $0x8] sm:$0xff]   ;;  %v500_v3 = vld [vmem:[%s177_s11] sm:$0xff]   ;;  %vm237_vm1 = vcmask 261120  }
  0x56   : > { %618 = vsyncadd (%p896_p11), [#allocation6], 4294967040  ;;  %427 = vmatprep.subr.bf16.mxu0 %v643_v0  ;;  %431 = vmatprep.mubr.msk.bf16.mxu0 %vm644_vm0, %v643_v0  ;;  %v412_v4 = vld [vmem:[%s881_s2] ss:$0 sm:$0xff]  ;;  %s411_s8 = sshll.u32 %s813_s6, 4  ;;  %s423_s25 = sshll.u32 %s689_s16, 8 }
  0x57   : > { %428 = vmatpush3.bf16.msra.mxu0 %v498_v1  ;;  %s203_s9 = scalar_lea.vmem [#allocation7], %s411_s8  ;;  %s835_s27 = scalar_lea.hbm %s882_s3, %s423_s25 }
  0x58   : > { %429 = vmatprep.subr.bf16.mxu0 %v643_v0  ;;  %s318_s4 = sshll.u32 %s203_s9, 4  ;;  %s305_s28 = scalar_lea.sflag [#allocation4], %s813_s6  ;;  %s830_s4 = int_to_ptr.vmem [resolvable:$true] %s318_s4 }
  0x59   : > { %s567_s23 = scalar_lea.vmem %s830_s4, 256  ;;  %s645_s16 = smov [#allocation7]  }
  0x5a   : > { %p568_p4 = scmp.ne.s32.totalorder %s830_s4, %s567_s23  ;;  %s571_s29 = sshll.u32 %s645_s16, 4  ;;  %s572_s29 = int_to_ptr.vmem [resolvable:$false] %s571_s29 }
  0x5b   : > { %430 = vmatpush3.bf16.msra.mxu0 %v499_v2  ;;  %s573_s30 = scalar_lea.vmem %s572_s29, 512  ;;  %p574_p10 = scmp.lt.s32.totalorder %s830_s4, %s572_s29 }
  0x5c   : > { %p569_p6 = pnand %p568_p4, %p762_p12  ;;  %p575_p13 = scmp.lt.s32.totalorder %s573_s30, %s567_s23 }
  0x5e   : > { %432 = vmatmul.mubr.msk.bf16.vlgmr.msra.gmra.mrb[0].mxu0 %vm237_vm1, %v500_v3  ;;  %p570_p8 = pneg %p569_p6  ;;  %p576_p3 = por %p575_p13, %p574_p10 }
  0x60   : > { %p577_p7 = pnand %p576_p3, %p570_p8 }
 0x131   : > { %v275_v5 = vpop.f32.mrb[0].mxu0 }
 0x132   : > { %v276_v6 = vadd.f32 %v412_v4, %v275_v5  ;;  %v433_v7 = vpop.f32.mrb[1].mxu0 }
 0x133   : > { %v278_v8 = vpop.f32.mrb[2].mxu0 }
 0x134   : > { %282 = vmax.xlane.f32.xlu0 %v276_v6  ;;  %v434_v9 = vpop.f32.mrb[3].mxu0  ;;  %v279_v10 = vadd.f32 %v412_v4, %v278_v8 }
 0x138   : > { %284 = vmax.xlane.f32.xlu0 %v279_v10 }
 0x1c1   : > { %v283_v11 = vpop.xlane.xlu0 %282 }
 0x1c2   : > { %v286_v12 = vsub.f32 %v276_v6, %v283_v11 }
 0x1c4   : > { %v288_v13 = vmul.f32 1.442695, %v286_v12 }
 0x1c5   : > { %v285_v14 = vpop.xlane.xlu0 %284 }
 0x1c6   : > { %v287_v15 = vsub.f32 %v279_v10, %v285_v14  ;;  %501 = vpow2.f32 %v288_v13 }
 0x1c8   : > { %v290_v16 = vmul.f32 1.442695, %v287_v15 }
 0x1ca   : > { %503 = vpow2.f32 %v290_v16 }
 0x1d0   : > { %v502_v17 = vpop.eup %501 }
 0x1d1   : > { %292 = vadd.xlane.f32.xlu1 %v502_v17 }
 0x1d4   : > { %v504_v18 = vpop.eup %503 }
 0x1d5   : > { %294 = vadd.xlane.f32.xlu1 %v504_v18 }
 0x25e   : > { %v293_v19 = vpop.xlane.xlu1 %292 }
 0x25f   : > { %505 = vlog2.f32 %v293_v19 }
 0x262   : > { %v295_v20 = vpop.xlane.xlu1 %294 }
 0x263   : > { %507 = vlog2.f32 %v295_v20 }
 0x269   : > { %v506_v21 = vpop.eup %505 }
 0x26a   : > { %v297_v22 = vmul.f32 0.6931472, %v506_v21 }
 0x26c   : > { %v300_v23 = vsub.f32 %v286_v12, %v297_v22 }
 0x26d   : > { %v508_v24 = vpop.eup %507 }
 0x26e   : > { %302 = vst [vmem:[%s203_s9] sm:$0xff] %v300_v23  ;;  %v299_v25 = vmul.f32 0.6931472, %v508_v24 }
 0x270   : > { %v301_v26 = vsub.f32 %v287_v15, %v299_v25 }
 0x272   : > { %303 = vst [vmem:[%s203_s9 + $0x8] sm:$0xff] %v301_v26 }
 0x273   : > { %580 = shalt.err (!%p577_p7)
}
 0x274   : > { %s581_s22 = scalar_lea.hbm %s835_s27, 256  ;;  %s585_s11 = scalar_lea.hbm %s882_s3, 512 }
 0x275   : > { %p582_p9 = scmp.ne.s32.totalorder %s835_s27, %s581_s22  ;;  %p586_p5 = scmp.lt.u32.totalorder %s835_s27, %s882_s3 }
 0x276   : > { %p587_p2 = scmp.lt.u32.totalorder %s585_s11, %s581_s22  ;;  %p589_p4 = scmp.lt.u32.totalorder %s581_s22, %s835_s27 }
 0x277   : > { %p583_p1 = pnand %p582_p9, %p762_p12 }
 0x278   : > { %p588_p11 = por %p587_p2, %p586_p5 }
 0x279   : > { %p584_p0 = pneg %p583_p1 }
 0x27a   : > { %p590_p6 = por %p589_p4, %p588_p11 }
 0x27c   : > { %p591_p8 = pnand %p590_p6, %p584_p0 }
 0x27e   : > { %594 = shalt.err (!%p591_p8)
}
 0x27f   : > { %s646_s8 = smov 128   ;;  %s647_s9 = smov 8  }
 0x280   : > { %441 = dma.vmem_to_hbm [thread:$0]  (%p762_p12), %s830_s4, 256, %s835_s27, %s305_s28, %s646_s8, %s646_s8, %s647_s9  }
 0x281 PF: > { %s333_s25 = sand.u32 1, %s625_s12   ;;  %p897_p10 = scmp.ne.s32.totalorder %s887_s19, 0 }
 0x282   : > { %p898_p13 = scmp.ge.s32.totalorder %s637_s15, 2  ;;  %s334_s26 = scalar_lea.sflag [#allocation4], %s333_s25 }
 0x284   : > { %p452_p3 = pnand %p898_p13, %p897_p10 }
 0x286   : > { %620 = dma.done.wait (!%p452_p3), %s334_s26, 256  }
 0x287   : > { %622 = vsyncadd (!%p452_p3), %s334_s26, 4294967040  ;;  %p17_p7 = scmp.ge.s32.totalorder %s724_s24, 4   ;;  %s899_s12 = smov %s629_s13 }
 0x288   : > { %s900_s13 = smov %s633_s14  ;;  %s901_s14 = smov %s758_s17 }
 0x289   : > { %s902_s15 = smov %s724_s24  ;;  %19 = sbr.rel (!%p17_p7) target bundleno = 6 (0x6), region = 81 }
 0x290   :  { %339 = vsyncpa [#allocation3], 1 }
 0x291   :  { %341 = vsyncpa [#allocation3 + $0x1], 1 }
 0x292   :  { %342 = vsyncpa [#allocation6], 1 }
 0x293   :  { %343 = vsyncpa [#allocation4], 1 }
 0x294   :  { %345 = vsyncpa [#allocation4 + $0x1], 1 }

// kernel: tpu_custom_call.1
= control target key start
LH: loop header
LB: loop body
LE: loop exit
PB: predicated region body
PF: predicated region fallthrough
CT: control target
= control target key end

     0   :  { %8 = vsyncpa [#allocation3], 0  ;;  %s879_s0 = inlined_call_operand.hbm [shape: bf16[32,32], index: 0, kind: input, shape index: {}]   ;;  %s880_s1 = inlined_call_operand.hbm [shape: bf16[32,128], index: 1, kind: input, shape index: {}]   ;;  %s881_s2 = inlined_call_operand.vmem [shape: f32[1,128], index: 2, kind: input, shape index: {}]   ;;  %s882_s3 = inlined_call_operand.hbm [shape: f32[32,128], index: 3, kind: output, shape index: {}]  }
   0x1   :  { %10 = vsyncpa [#allocation3 + $0x1], 0 }
   0x2   :  { %11 = vsyncpa [#allocation6], 0 }
   0x3   :  { %12 = vsyncpa [#allocation4], 0 }
   0x4   :  { %14 = vsyncpa [#allocation4 + $0x1], 0  ;;  %s668_s12 = smov 0   ;;  %s670_s13 = smov 0  }
   0x5   :  { %s672_s14 = smov 0   ;;  %s674_s15 = smov 0  }
   0x6 LB: > { %s689_s16 = sadd.s32 4294967295, %s637_s15   ;;  %s401_s17 = sadd.s32 4294967294, %s637_s15   ;;  %s637_s15 = sphi %s674_s15, %s902_s15   ;;  %s633_s14 = sphi %s672_s14, %s901_s14   ;;  %s629_s13 = sphi %s670_s13, %s900_s13   ;;  %s625_s12 = sphi %s668_s12, %s899_s12  }
   0x7   : > { %p40_p0 = scmp.ne.s32.totalorder %s629_s13, %s625_s12  ;;  %p883_p1 = scmp.eq.s32.totalorder %s689_s16, 0 }
   0x8   : > { %p112_p3 = scmp.eq.s32.totalorder %s401_s17, 1  ;;  %p402_p5 = scmp.ge.s32.totalorder %s637_s15, 1 }
   0x9   : > { %p698_p4 = por %p883_p1, %p40_p0  ;;  %p119_p7 = scmp.lt.s32.totalorder %s637_s15, 3 }
   0xa   : > { %p703_p6 = por %p112_p3, %p40_p0  ;;  %s639_s21 = smov [#allocation5]  }
   0xb   : > { %s886_s18 = scalar_select %p698_p4, 1, 0 }
   0xc   : > { %s887_s19 = scalar_select %p703_p6, 1, 0 }
   0xd   : > { %p708_p8 = pnand %p402_p5, %p119_p7  ;;  %s131_s22 = sshll.u32 %s639_s21, 4  ;;  %s712_s22 = int_to_ptr.vmem [resolvable:$true] %s131_s22 }
   0xe   : > { %s724_s24 = sadd.s32 1, %s637_s15   ;;  %s27_s25 = sadd.s32 1, %s633_s14 }
   0xf   : > { %s888_s20 = scalar_select %p708_p8, 1, 0 }
  0x10   : > { %p443_p9 = pneg %p708_p8  ;;  %s24_s26 = ssub.s32 %s637_s15, %s724_s24 }
  0x11   : > { %s509_s29 = scalar_lea.hbm %s880_s1, 256 }
  0x12   : > { %p719_p11 = pnand %p443_p9, %p883_p1  ;;  %p510_p12 = scmp.ne.s32.totalorder %s880_s1, %s509_s29 }
  0x13   : > { %p516_p5 = scmp.lt.u32.totalorder %s509_s29, %s880_s1 }
  0x14   : > { %p511_p13 = pneg %p719_p11 }
  0x16   : > { %p512_p0 = pnand %p511_p13, %p510_p12 }
  0x18   : > { %p513_p3 = pneg %p512_p0 }
  0x1a   : > { %p518_p7 = pnand %p516_p5, %p513_p3 }
  0x1c   : > { %521 = shalt.err (!%p518_p7)
}
  0x1d   : > { %s522_s7 = scalar_lea.vmem %s712_s22, 256  ;;  %p530_p2 = scmp.lt.s32.totalorder %s712_s22, %s712_s22 }
  0x1e   : > { %p523_p9 = scmp.ne.s32.totalorder %s712_s22, %s522_s7  ;;  %p531_p6 = scmp.lt.s32.totalorder %s522_s7, %s522_s7 }
  0x20   : > { %p525_p10 = pnand %p523_p9, %p511_p13  ;;  %p532_p4 = por %p531_p6, %p530_p2 }
  0x22   : > { %p526_p1 = pneg %p525_p10 }
  0x24   : > { %p533_p8 = pnand %p532_p4, %p526_p1 }
  0x26   : > { %536 = shalt.err (!%p533_p8)
}
  0x27   : > { %s640_s8 = smov 64   ;;  %s641_s9 = smov 4  }
  0x28   : > { %446 = dma.hbm_to_vmem [thread:$0]  (!%p719_p11), %s880_s1, 256, %s712_s22, [#allocation6], %s640_s8, %s640_s8, %s641_s9  }
  0x29   : > { %p25_p1 = scmp.eq.s32.totalorder %s24_s26, 0  ;;  %p34_p2 = scmp.ne.s32.totalorder %s633_s14, %s629_s13 }
  0x2a   : > { %p35_p4 = scmp.eq.s32.totalorder %s637_s15, 0  ;;  %p456_p6 = scmp.lt.s32.totalorder %s637_s15, 2 }
  0x2b   : > { %s758_s17 = scalar_select %p25_p1, %s633_s14, %s27_s25  }
  0x2c   : > { %p36_p8 = por %p35_p4, %p34_p2  ;;  %p890_p10 = scmp.eq.s32.totalorder %s689_s16, 1 }
  0x2d   : > { %s148_s23 = sand.u32 1, %s633_s14   ;;  %s422_s27 = sshll.u32 %s637_s15, 7 }
  0x2e   : > { %p762_p12 = por %p890_p10, %p34_p2  ;;  %s405_s28 = sshll.u32 %s148_s23, 3 }
  0x2f   : > { %s771_s4 = scalar_lea.hbm %s879_s0, %s422_s27  ;;  %s152_s22 = scalar_lea.vmem [#allocation2], %s405_s28 }
  0x30   : > { %s159_s25 = sshll.u32 %s152_s22, 4  ;;  %p773_p11 = pnand %p456_p6, %p36_p8  ;;  %s777_s25 = int_to_ptr.vmem [resolvable:$true] %s159_s25 }
  0x31   : > { %s779_s5 = scalar_lea.sflag [#allocation3], %s148_s23  ;;  %s537_s6 = scalar_lea.hbm %s771_s4, 128 }
  0x32   : > { %p538_p13 = scmp.ne.s32.totalorder %s771_s4, %s537_s6  ;;  %p539_p0 = pneg %p773_p11 }
  0x33   : > { %s542_s11 = scalar_lea.hbm %s879_s0, 256  ;;  %p543_p7 = scmp.lt.u32.totalorder %s771_s4, %s879_s0 }
  0x34   : > { %p540_p3 = pnand %p539_p0, %p538_p13  ;;  %p544_p9 = scmp.lt.u32.totalorder %s542_s11, %s537_s6 }
  0x35   : > { %p546_p2 = scmp.lt.u32.totalorder %s537_s6, %s771_s4 }
  0x36   : > { %p541_p5 = pneg %p540_p3  ;;  %p545_p1 = por %p544_p9, %p543_p7 }
  0x38   : > { %p547_p4 = por %p546_p2, %p545_p1 }
  0x3a   : > { %p548_p6 = pnand %p547_p4, %p541_p5 }
  0x3c   : > { %551 = shalt.err (!%p548_p6)
}
  0x3d   : > { %s552_s23 = scalar_lea.vmem %s777_s25, 128  ;;  %s642_s29 = smov [#allocation2]  }
  0x3e   : > { %p553_p8 = scmp.ne.s32.totalorder %s777_s25, %s552_s23  ;;  %s557_s30 = sshll.u32 %s642_s29, 4  ;;  %s558_s30 = int_to_ptr.vmem [resolvable:$false] %s557_s30 }
  0x3f   : > { %s559_s22 = scalar_lea.vmem %s558_s30, 256  ;;  %p560_p3 = scmp.lt.s32.totalorder %s777_s25, %s558_s30 }
  0x40   : > { %p555_p10 = pnand %p553_p8, %p539_p0  ;;  %p561_p7 = scmp.lt.s32.totalorder %s559_s22, %s552_s23 }
  0x42   : > { %p556_p13 = pneg %p555_p10  ;;  %p562_p9 = por %p561_p7, %p560_p3 }
  0x44   : > { %p563_p1 = pnand %p562_p9, %p556_p13 }
  0x46   : > { %566 = shalt.err (!%p563_p1)
}
  0x47   : > { %450 = dma.hbm_to_vmem [thread:$0]  (!%p773_p11), %s771_s4, 128, %s777_s25, %s779_s5, %s640_s8, %s640_s8, %s641_s9  }
  0x48   : > { %p893_p0 = scmp.ne.s32.totalorder %s888_s20, 0 }
  0x49   : > { %s813_s6 = sand.u32 (!%p893_p0), 1, %s629_s13   ;;  %p894_p5 = scmp.ne.s32.totalorder (!%p893_p0), %s886_s18, 0 }
  0x4a   : > { %171 = sbr.rel (%p893_p0) target bundleno = 641 (0x281), region = 32  ;;  %s409_s7 = sshll.u32 (!%p893_p0), %s813_s6, 3 }
  0x4b   : > { %s174_s10 = scalar_lea.sflag (!%p893_p0), [#allocation3], %s813_s6  ;;  %s177_s11 = scalar_lea.vmem (!%p893_p0), [#allocation2], %s409_s7 }
  0x51   : > { %612 = dma.done.wait (%p894_p5), %s174_s10, 128  }
  0x52   : > { %614 = vsyncadd (%p894_p5), %s174_s10, 4294967168  ;;  %p895_p2 = scmp.eq.s32.totalorder %s689_s16, 0 }
  0x54   : > { %616 = dma.done.wait (%p895_p2), [#allocation6], 256   ;;  %p896_p11 = pmov %p895_p2 }
  0x55   : > { %v643_v0 = vmov 0.0   ;;  %vm644_vm0 = vmmov 0   ;;  %v498_v1 = vld [vmem:[#allocation5] sm:$0xff]   ;;  %v499_v2 = vld [vmem:[#allocation5 + $0x8] sm:$0xff]   ;;  %v500_v3 = vld [vmem:[%s177_s11] sm:$0xff]   ;;  %vm237_vm1 = vcmask 261120  }
  0x56   : > { %618 = vsyncadd (%p896_p11), [#allocation6], 4294967040  ;;  %427 = vmatprep.subr.bf16.mxu0 %v643_v0  ;;  %431 = vmatprep.mubr.msk.bf16.mxu0 %vm644_vm0, %v643_v0  ;;  %v412_v4 = vld [vmem:[%s881_s2] ss:$0 sm:$0xff]  ;;  %s411_s8 = sshll.u32 %s813_s6, 4  ;;  %s423_s25 = sshll.u32 %s689_s16, 8 }
  0x57   : > { %428 = vmatpush3.bf16.msra.mxu0 %v498_v1  ;;  %s203_s9 = scalar_lea.vmem [#allocation7], %s411_s8  ;;  %s835_s27 = scalar_lea.hbm %s882_s3, %s423_s25 }
  0x58   : > { %429 = vmatprep.subr.bf16.mxu0 %v643_v0  ;;  %s318_s4 = sshll.u32 %s203_s9, 4  ;;  %s305_s28 = scalar_lea.sflag [#allocation4], %s813_s6  ;;  %s830_s4 = int_to_ptr.vmem [resolvable:$true] %s318_s4 }
  0x59   : > { %s567_s23 = scalar_lea.vmem %s830_s4, 256  ;;  %s645_s16 = smov [#allocation7]  }
  0x5a   : > { %p568_p4 = scmp.ne.s32.totalorder %s830_s4, %s567_s23  ;;  %s571_s29 = sshll.u32 %s645_s16, 4  ;;  %s572_s29 = int_to_ptr.vmem [resolvable:$false] %s571_s29 }
  0x5b   : > { %430 = vmatpush3.bf16.msra.mxu0 %v499_v2  ;;  %s573_s30 = scalar_lea.vmem %s572_s29, 512  ;;  %p574_p10 = scmp.lt.s32.totalorder %s830_s4, %s572_s29 }
  0x5c   : > { %p569_p6 = pnand %p568_p4, %p762_p12  ;;  %p575_p13 = scmp.lt.s32.totalorder %s573_s30, %s567_s23 }
  0x5e   : > { %432 = vmatmul.mubr.msk.bf16.vlgmr.msra.gmra.mrb[0].mxu0 %vm237_vm1, %v500_v3  ;;  %p570_p8 = pneg %p569_p6  ;;  %p576_p3 = por %p575_p13, %p574_p10 }
  0x60   : > { %p577_p7 = pnand %p576_p3, %p570_p8 }
 0x131   : > { %v275_v5 = vpop.f32.mrb[0].mxu0 }
 0x132   : > { %v276_v6 = vadd.f32 %v412_v4, %v275_v5  ;;  %v433_v7 = vpop.f32.mrb[1].mxu0 }
 0x133   : > { %v278_v8 = vpop.f32.mrb[2].mxu0 }
 0x134   : > { %282 = vmax.xlane.f32.xlu0 %v276_v6  ;;  %v434_v9 = vpop.f32.mrb[3].mxu0  ;;  %v279_v10 = vadd.f32 %v412_v4, %v278_v8 }
 0x138   : > { %284 = vmax.xlane.f32.xlu0 %v279_v10 }
 0x1c1   : > { %v283_v11 = vpop.xlane.xlu0 %282 }
 0x1c2   : > { %v286_v12 = vsub.f32 %v276_v6, %v283_v11 }
 0x1c4   : > { %v288_v13 = vmul.f32 1.442695, %v286_v12 }
 0x1c5   : > { %v285_v14 = vpop.xlane.xlu0 %284 }
 0x1c6   : > { %v287_v15 = vsub.f32 %v279_v10, %v285_v14  ;;  %501 = vpow2.f32 %v288_v13 }
 0x1c8   : > { %v290_v16 = vmul.f32 1.442695, %v287_v15 }
 0x1ca   : > { %503 = vpow2.f32 %v290_v16 }
 0x1d0   : > { %v502_v17 = vpop.eup %501 }
 0x1d1   : > { %292 = vadd.xlane.f32.xlu1 %v502_v17 }
 0x1d4   : > { %v504_v18 = vpop.eup %503 }
 0x1d5   : > { %294 = vadd.xlane.f32.xlu1 %v504_v18 }
 0x25e   : > { %v293_v19 = vpop.xlane.xlu1 %292 }
 0x25f   : > { %505 = vlog2.f32 %v293_v19 }
 0x262   : > { %v295_v20 = vpop.xlane.xlu1 %294 }
 0x263   : > { %507 = vlog2.f32 %v295_v20 }
 0x269   : > { %v506_v21 = vpop.eup %505 }
 0x26a   : > { %v297_v22 = vmul.f32 0.6931472, %v506_v21 }
 0x26c   : > { %v300_v23 = vsub.f32 %v286_v12, %v297_v22 }
 0x26d   : > { %v508_v24 = vpop.eup %507 }
 0x26e   : > { %302 = vst [vmem:[%s203_s9] sm:$0xff] %v300_v23  ;;  %v299_v25 = vmul.f32 0.6931472, %v508_v24 }
 0x270   : > { %v301_v26 = vsub.f32 %v287_v15, %v299_v25 }
 0x272   : > { %303 = vst [vmem:[%s203_s9 + $0x8] sm:$0xff] %v301_v26 }
 0x273   : > { %580 = shalt.err (!%p577_p7)
}
 0x274   : > { %s581_s22 = scalar_lea.hbm %s835_s27, 256  ;;  %s585_s11 = scalar_lea.hbm %s882_s3, 512 }
 0x275   : > { %p582_p9 = scmp.ne.s32.totalorder %s835_s27, %s581_s22  ;;  %p586_p5 = scmp.lt.u32.totalorder %s835_s27, %s882_s3 }
 0x276   : > { %p587_p2 = scmp.lt.u32.totalorder %s585_s11, %s581_s22  ;;  %p589_p4 = scmp.lt.u32.totalorder %s581_s22, %s835_s27 }
 0x277   : > { %p583_p1 = pnand %p582_p9, %p762_p12 }
 0x278   : > { %p588_p11 = por %p587_p2, %p586_p5 }
 0x279   : > { %p584_p0 = pneg %p583_p1 }
 0x27a   : > { %p590_p6 = por %p589_p4, %p588_p11 }
 0x27c   : > { %p591_p8 = pnand %p590_p6, %p584_p0 }
 0x27e   : > { %594 = shalt.err (!%p591_p8)
}
 0x27f   : > { %s646_s8 = smov 128   ;;  %s647_s9 = smov 8  }
 0x280   : > { %441 = dma.vmem_to_hbm [thread:$0]  (%p762_p12), %s830_s4, 256, %s835_s27, %s305_s28, %s646_s8, %s646_s8, %s647_s9  }
 0x281 PF: > { %s333_s25 = sand.u32 1, %s625_s12   ;;  %p897_p10 = scmp.ne.s32.totalorder %s887_s19, 0 }
 0x282   : > { %p898_p13 = scmp.ge.s32.totalorder %s637_s15, 2  ;;  %s334_s26 = scalar_lea.sflag [#allocation4], %s333_s25 }
 0x284   : > { %p452_p3 = pnand %p898_p13, %p897_p10 }
 0x286   : > { %620 = dma.done.wait (!%p452_p3), %s334_s26, 256  }
 0x287   : > { %622 = vsyncadd (!%p452_p3), %s334_s26, 4294967040  ;;  %p17_p7 = scmp.ge.s32.totalorder %s724_s24, 4   ;;  %s899_s12 = smov %s629_s13 }
 0x288   : > { %s900_s13 = smov %s633_s14  ;;  %s901_s14 = smov %s758_s17 }
 0x289   : > { %s902_s15 = smov %s724_s24  ;;  %19 = sbr.rel (!%p17_p7) target bundleno = 6 (0x6), region = 81 }
 0x290   :  { %339 = vsyncpa [#allocation3], 1 }
 0x291   :  { %341 = vsyncpa [#allocation3 + $0x1], 1 }
 0x292   :  { %342 = vsyncpa [#allocation6], 1 }
 0x293   :  { %343 = vsyncpa [#allocation4], 1 }
 0x294   :  { %345 = vsyncpa [#allocation4 + $0x1], 1 }

</bundles_post_ra>
